<compile_context>
chip_gen: v6e
topology: v6e:2x2x1
jax: 0.10.0
libtpu: 0.0.40
codegen_flags: <defaults>
</compile_context>

<pallas_src>
import math
import functools

import numpy as np
import jax
import jax.numpy as jnp
from jax import lax
from jax.experimental import pallas as pl
from jax.experimental.pallas import tpu as pltpu


# --------------------------------------------------------------------------
# kernel
# --------------------------------------------------------------------------
def _residual_block_kernel(d, C,
                           x_ref, cond_ref, halo_ref, bias_ref,
                           wd_ref, wc_ref, wo_ref, bo_ref,
                           res_ref, skip_ref):
    """One (batch, sequence-tile) block.  NCL layout: (C, TL) tiles."""
    x = x_ref[0]                       # (C, TL)   f32
    cp = cond_ref[0]                   # (1, TL)   f32 circularly padded conditioner
    bias = bias_ref[0]                 # (2C, 1)   f32 per-batch combined bias
                                       #           = taps_sum @ diff_proj + bd + bc

    if d > 0:
        # halo columns: [:, :d] = x[(t-d) mod L] sources for the tile head,
        #               [:, d:] = x[(t+d) mod L] sources for the tile tail.
        halo = halo_ref[0, 0]          # (C, 2d)
        tl = x.shape[1]
        x_m = jnp.concatenate([halo[:, :d], x[:, :tl - d]], axis=1)  # x[(t-d) mod L]
        x_p = jnp.concatenate([x[:, d:], halo[:, d:]], axis=1)       # x[(t+d) mod L]
    else:                              # dilation % L == 0 -> circular shift is identity
        x_m = x
        x_p = x

    # Fused 3-tap dilated conv for both gate and filter halves:
    #   (2C, 3C) @ (3C, TL) -> (2C, TL), contraction 3C, lane-dense output.
    big = jnp.concatenate([x_m, x, x_p], axis=0).astype(wd_ref.dtype)
    u = jnp.dot(wd_ref[...], big, preferred_element_type=jnp.float32)

    # conditioner 1x1 conv = rank-1 outer product; diffusion/conv/cond biases
    # are pre-combined per batch in the wrapper.
    u = u + wc_ref[...] * cp + bias                             # (2C, TL)

    z = jax.nn.sigmoid(u[:C]) * jnp.tanh(u[C:])                 # (C, TL)

    # Fused output projection (residual | skip): (2C, C) @ (C, TL).
    o = jnp.dot(wo_ref[...], z.astype(wo_ref.dtype),
                preferred_element_type=jnp.float32) + bo_ref[...]
    o = jnp.where(o >= 0.0, o, 0.4 * o)                         # leaky_relu(., 0.4)

    res_ref[0] = ((x + o[:C]) * (1.0 / math.sqrt(2.0))).astype(res_ref.dtype)
    skip_ref[0] = o[C:].astype(skip_ref.dtype)


# --------------------------------------------------------------------------
# wrapper
# --------------------------------------------------------------------------
def _choose_seq_tile(L, d, target):
    """Largest multiple of 128 that divides L, is <= target, and is > dilation.

    Falls back to a single whole-L tile when no such tile exists (small L or
    very large dilation), which is always valid since d = dilation % L < L.
    """
    if L <= max(target, 128):
        return L
    tl = (min(target, L) // 128) * 128
    while tl >= 128:
        if L % tl == 0 and tl > d:
            return tl
        tl -= 128
    return L


def residual_block_forward(params, x_ncl, cond_ncl, diffusion_step, dilation,
                           *, matmul_dtype=jnp.bfloat16, seq_tile=1024):
    f32 = jnp.float32
    B, C, L = x_ncl.shape
    Lc = cond_ncl.shape[-1]
    assert Lc + 4 == L, "conditioner length must be L - 4 for shapes to match"
    assert Lc >= 2

    d = int(dilation) % L                       # effective circular shift
    TL = _choose_seq_tile(L, d, seq_tile)       # sequence tile (lane dimension)
    NT = L // TL
    assert L % TL == 0 and (d < TL)

    x = x_ncl.astype(f32)                       # (B, C, L) -- no layout transpose
    cond = cond_ncl.astype(f32)
    # conditioner circular padding=2 -> length L; sequence stays on lanes
    cond_pad = jnp.concatenate([cond[..., -2:], cond, cond[..., :2]], axis=-1)

    # ---- weight packing: fuse taps / halves so the kernel does 2 matmuls ----
    wd, bd = params["dilated_w"].astype(f32), params["dilated_b"].astype(f32)  # (2C,C,3),(2C,)
    wc, bc = params["cond_w"].astype(f32), params["cond_b"].astype(f32)        # (2C,1,1),(2C,)
    wo, bo = params["out_w"].astype(f32), params["out_b"].astype(f32)          # (2C,C,1),(2C,)

    wd_p = jnp.concatenate([wd[:, :, 0], wd[:, :, 1], wd[:, :, 2]],
                           axis=1).astype(matmul_dtype)      # (2C, 3C) taps [t-d, t, t+d]
    wo_p = wo[:, :, 0].astype(matmul_dtype)                  # (2C, C)
    wc_col = wc[:, 0, :]                                     # (2C, 1), kept f32
    bo_col = bo.reshape(2 * C, 1)

    # Diffusion Linear + its dilated-conv contribution, folded into a per-batch
    # bias (tiny f32/HIGHEST math hoisted out of the kernel):
    #   conv(x + dp) = conv(x) + (tap0 + tap1 + tap2) @ dp
    hp = lax.Precision.HIGHEST
    dproj = (jnp.dot(diffusion_step.astype(f32), params["lin_w"].T.astype(f32),
                     precision=hp) + params["lin_b"].astype(f32))       # (B, C)
    tap_sum = wd.sum(axis=2)                                            # (2C, C)
    bias_all = (jnp.dot(dproj, tap_sum.T, precision=hp)
                + (bd + bc)[None, :]).reshape(B, 2 * C, 1)              # (B, 2C, 1)

    # Circular halo columns for the dilated conv, gathered once in the wrapper:
    # tile ti (start s = ti*TL) needs x at positions [s-d, s) and [s+TL, s+TL+d) mod L.
    if d > 0:
        idx = []
        for ti in range(NT):
            s = ti * TL
            idx += [(s - d + j) % L for j in range(d)]
            idx += [(s + TL + j) % L for j in range(d)]
        idx = np.asarray(idx, dtype=np.int32)
        halos = x[:, :, idx].reshape(B, C, NT, 2 * d).transpose(0, 2, 1, 3)
    else:
        halos = jnp.zeros((B, NT, C, 2), f32)   # dummy, statically unused
    HW = halos.shape[-1]

    # ---- specs ----
    def tile_map(b, t):
        return (b, 0, t)

    def whole(shape):
        return pl.BlockSpec(shape, lambda b, t, _n=len(shape): (0,) * _n)

    in_specs = [
        pl.BlockSpec((1, C, TL), tile_map),                      # x
        pl.BlockSpec((1, 1, TL), tile_map),                      # padded conditioner
        pl.BlockSpec((1, 1, C, HW), lambda b, t: (b, t, 0, 0)),  # circular halos
        pl.BlockSpec((1, 2 * C, 1), lambda b, t: (b, 0, 0)),     # per-batch combined bias
        whole((2 * C, 3 * C)),                                   # fused dilated-conv weights
        whole((2 * C, 1)),                                       # conditioner 1x1 weights
        whole((2 * C, C)),                                       # fused output-proj weights
        whole((2 * C, 1)),                                       # output-proj bias
    ]
    out_specs = [pl.BlockSpec((1, C, TL), tile_map),
                 pl.BlockSpec((1, C, TL), tile_map)]
    out_shape = (jax.ShapeDtypeStruct((B, C, L), f32),
                 jax.ShapeDtypeStruct((B, C, L), f32))

    # ---- VMEM budget / cost estimate ----
    mm_bytes = jnp.dtype(matmul_dtype).itemsize
    itile = C * TL * 4
    weight_bytes = (2 * C * 3 * C + 2 * C * C) * mm_bytes + 3 * 2 * C * 4
    est = (2 * (itile + TL * 4 + C * HW * 4 + 2 * C * 4)        # double-buffered inputs
           + 2 * weight_bytes                                   # (conservatively) x2 weights
           + 2 * 2 * 2 * itile                                  # double-buffered outputs
           + 24 * itile)                                        # live temporaries
    vmem_limit = int(min(max(2 * est, 32 * 1024 * 1024), 48 * 1024 * 1024))

    cost = pl.CostEstimate(
        flops=int(2 * B * L * 2 * C * (3 * C + C)),
        transcendentals=int(2 * B * L * C),
        bytes_accessed=int(4 * (3 * B * C * L + B * L + B * NT * C * HW + B * 2 * C)
                           + B * NT * weight_bytes))

    kernel = functools.partial(_residual_block_kernel, d, C)

    res, skip = pl.pallas_call(
        kernel,
        out_shape=out_shape,
        grid_spec=pltpu.PrefetchScalarGridSpec(
            num_scalar_prefetch=0,
            grid=(B, NT),
            in_specs=in_specs,
            out_specs=out_specs),
        compiler_params=pltpu.CompilerParams(
            dimension_semantics=("parallel", "parallel"),
            vmem_limit_bytes=vmem_limit),
        cost_estimate=cost,
    )(x, cond_pad, halos, bias_all, wd_p, wc_col, wo_p, bo_col)

    return res, skip


# --------------------------------------------------------------------------
# pure-JAX reference (mirrors the PyTorch forward, NCL layout)
# --------------------------------------------------------------------------
def residual_block_ref(params, x, cond, dstep, dilation):
    C = x.shape[1]
    d = dilation
    dn = ("NCH", "OIH", "NCH")
    hp = lax.Precision.HIGHEST

    dp = jnp.matmul(dstep, params["lin_w"].T, precision=hp) + params["lin_b"]
    y = x + dp[:, :, None]

    yp = jnp.concatenate([y[..., -d:], y, y[..., :d]], axis=-1)    # circular pad
    conv = lax.conv_general_dilated(yp, params["dilated_w"], (1,), "VALID",
                                    rhs_dilation=(d,), dimension_numbers=dn,
                                    precision=hp) + params["dilated_b"][None, :, None]

    cp = jnp.concatenate([cond[..., -2:], cond, cond[..., :2]], axis=-1)
    cproj = lax.conv_general_dilated(cp, params["cond_w"], (1,), "VALID",
                                     dimension_numbers=dn,
                                     precision=hp) + params["cond_b"][None, :, None]

    y2 = conv + cproj
    gate, filt = y2[:, :C], y2[:, C:]
    z = jax.nn.sigmoid(gate) * jnp.tanh(filt)
    out = lax.conv_general_dilated(z, params["out_w"], (1,), "VALID",
                                   dimension_numbers=dn,
                                   precision=hp) + params["out_b"][None, :, None]
    out = jnp.where(out >= 0, out, 0.4 * out)
    return (x + out[:, :C]) / math.sqrt(2.0), out[:, C:]


# --------------------------------------------------------------------------
# test
# --------------------------------------------------------------------------
def _make_inputs(key, B, C, L, H):
    Lc = L - 4
    ks = jax.random.split(key, 11)
    params = {
        "dilated_w": jax.random.normal(ks[0], (2 * C, C, 3), jnp.float32) * math.sqrt(2.0 / (C * 3)),
        "dilated_b": jax.random.normal(ks[1], (2 * C,), jnp.float32) * 0.1,
        "lin_w":     jax.random.normal(ks[2], (C, H), jnp.float32) * math.sqrt(1.0 / H),
        "lin_b":     jax.random.normal(ks[3], (C,), jnp.float32) * 0.1,
        "cond_w":    jax.random.normal(ks[4], (2 * C, 1, 1), jnp.float32) * math.sqrt(2.0),
        "cond_b":    jax.random.normal(ks[5], (2 * C,), jnp.float32) * 0.1,
        "out_w":     jax.random.normal(ks[6], (2 * C, C, 1), jnp.float32) * math.sqrt(2.0 / C),
        "out_b":     jax.random.normal(ks[7], (2 * C,), jnp.float32) * 0.1,
    }
    x = jax.random.normal(ks[8], (B, C, L), jnp.float32)
    cond = jax.random.normal(ks[9], (B, 1, Lc), jnp.float32)
    dstep = jax.random.normal(ks[10], (B, H), jnp.float32)
    return params, x, cond, dstep


def _check_case(key, B, C, L, H, dil, seq_tile):
    params, x, cond, dstep = _make_inputs(key, B, C, L, H)
    res_ref, skip_ref = residual_block_ref(params, x, cond, dstep, dil)

    # Tolerances account for MXU (bf16-class) matmul precision vs the f32
    # HIGHEST-precision reference.
    for mm_dtype, tol in ((jnp.bfloat16, 2e-1), (jnp.float32, 1e-1)):
        fwd = jax.jit(functools.partial(residual_block_forward,
                                        matmul_dtype=mm_dtype,
                                        seq_tile=seq_tile),
                      static_argnums=4)
        res, skip = jax.block_until_ready(fwd(params, x, cond, dstep, dil))
        assert res.shape == (B, C, L) and skip.shape == (B, C, L)
        assert bool(jnp.isfinite(res).all()) and bool(jnp.isfinite(skip).all())
        err = max(float(jnp.max(jnp.abs(res - res_ref))),
                  float(jnp.max(jnp.abs(skip - skip_ref))))
        assert err < tol, f"max abs error {err} (matmul dtype {mm_dtype}, tol {tol})"


if __name__ == "__main__":
    base_key = jax.random.PRNGKey(0)
    # small case: whole L fits in one tile per batch element
    _check_case(base_key, B=2, C=4, L=16, H=32, dil=2, seq_tile=1024)
    # multi-tile case: exercises the sequence tiling + circular-halo path
    _check_case(jax.random.fold_in(base_key, 1), B=1, C=8, L=256, H=16, dil=4,
                seq_tile=128)
    print("KERNEL_OK")
</pallas_src>

<mosaic_0001>
module attributes {stable_mosaic.version = 11 : i64} {
  func.func @_residual_block_kernel(%arg0: i32, %arg1: i32, %arg2: memref<1x4x16xf32, #tpu.memory_space<vmem>>, %arg3: memref<1x1x16xf32, #tpu.memory_space<vmem>>, %arg4: memref<1x1x4x4xf32, #tpu.memory_space<vmem>>, %arg5: memref<1x8x1xf32, #tpu.memory_space<vmem>>, %arg6: memref<8x12xbf16, #tpu.memory_space<vmem>>, %arg7: memref<8x1xf32, #tpu.memory_space<vmem>>, %arg8: memref<8x4xbf16, #tpu.memory_space<vmem>>, %arg9: memref<8x1xf32, #tpu.memory_space<vmem>>, %arg10: memref<1x4x16xf32, #tpu.memory_space<vmem>>, %arg11: memref<1x4x16xf32, #tpu.memory_space<vmem>>) attributes {dimension_semantics = [#tpu.dimension_semantics<parallel>, #tpu.dimension_semantics<parallel>], iteration_bounds = array<i64: 2, 1>, scalar_prefetch = 0 : i64, scratch_operands = 0 : i64, tpu.core_type = #tpu.core_type<tc>, window_params = [{transform_indices = @transform_0, window_bounds = array<i64: 1, 4, 16>}, {transform_indices = @transform_1, window_bounds = array<i64: 1, 1, 16>}, {transform_indices = @transform_2, window_bounds = array<i64: 1, 1, 4, 4>}, {transform_indices = @transform_3, window_bounds = array<i64: 1, 8, 1>}, {pipeline_mode = #tpu.pipeline_mode<synchronous>, transform_indices = @transform_4, window_bounds = array<i64: 8, 12>}, {pipeline_mode = #tpu.pipeline_mode<synchronous>, transform_indices = @transform_5, window_bounds = array<i64: 8, 1>}, {pipeline_mode = #tpu.pipeline_mode<synchronous>, transform_indices = @transform_6, window_bounds = array<i64: 8, 4>}, {pipeline_mode = #tpu.pipeline_mode<synchronous>, transform_indices = @transform_7, window_bounds = array<i64: 8, 1>}, {transform_indices = @transform_8, window_bounds = array<i64: 1, 4, 16>}, {transform_indices = @transform_9, window_bounds = array<i64: 1, 4, 16>}]} {
    %c0 = arith.constant 0 : index
    %c0_0 = arith.constant 0 : index
    %c0_1 = arith.constant 0 : index
    %0 = vector.load %arg2[%c0, %c0_0, %c0_1] : memref<1x4x16xf32, #tpu.memory_space<vmem>>, vector<1x4x16xf32>
    %1 = vector.shape_cast %0 : vector<1x4x16xf32> to vector<4x16xf32>
    %c0_2 = arith.constant 0 : index
    %c0_3 = arith.constant 0 : index
    %c0_4 = arith.constant 0 : index
    %2 = vector.load %arg3[%c0_2, %c0_3, %c0_4] : memref<1x1x16xf32, #tpu.memory_space<vmem>>, vector<1x1x16xf32>
    %3 = vector.shape_cast %2 : vector<1x1x16xf32> to vector<1x16xf32>
    %c0_5 = arith.constant 0 : index
    %c0_6 = arith.constant 0 : index
    %c0_7 = arith.constant 0 : index
    %4 = vector.load %arg5[%c0_5, %c0_6, %c0_7] : memref<1x8x1xf32, #tpu.memory_space<vmem>>, vector<1x8x1xf32>
    %5 = vector.shape_cast %4 : vector<1x8x1xf32> to vector<8x1xf32>
    %c0_8 = arith.constant 0 : index
    %c0_9 = arith.constant 0 : index
    %c0_10 = arith.constant 0 : index
    %c0_11 = arith.constant 0 : index
    %6 = vector.load %arg4[%c0_8, %c0_9, %c0_10, %c0_11] : memref<1x1x4x4xf32, #tpu.memory_space<vmem>>, vector<1x1x4x4xf32>
    %7 = vector.shape_cast %6 : vector<1x1x4x4xf32> to vector<4x4xf32>
    %8 = vector.extract_strided_slice %7 {offsets = [0, 0], sizes = [4, 2], strides = [1, 1]} : vector<4x4xf32> to vector<4x2xf32>
    %9 = vector.extract_strided_slice %1 {offsets = [0, 0], sizes = [4, 14], strides = [1, 1]} : vector<4x16xf32> to vector<4x14xf32>
    %10 = tpu.concatenate %8, %9 in 1 : vector<4x2xf32>, vector<4x14xf32> -> vector<4x16xf32>
    %11 = vector.extract_strided_slice %1 {offsets = [0, 2], sizes = [4, 14], strides = [1, 1]} : vector<4x16xf32> to vector<4x14xf32>
    %12 = vector.extract_strided_slice %7 {offsets = [0, 2], sizes = [4, 2], strides = [1, 1]} : vector<4x4xf32> to vector<4x2xf32>
    %13 = tpu.concatenate %11, %12 in 1 : vector<4x14xf32>, vector<4x2xf32> -> vector<4x16xf32>
    %14 = tpu.concatenate %10, %1, %13 in 0 : vector<4x16xf32>, vector<4x16xf32>, vector<4x16xf32> -> vector<12x16xf32>
    %15 = arith.truncf %14 : vector<12x16xf32> to vector<12x16xbf16>
    %c0_12 = arith.constant 0 : index
    %c0_13 = arith.constant 0 : index
    %16 = vector.load %arg6[%c0_12, %c0_13] : memref<8x12xbf16, #tpu.memory_space<vmem>>, vector<8x12xbf16>
    %cst = arith.constant dense<0.000000e+00> : vector<8x16xf32>
    %17 = tpu.matmul %16, %15, %cst {dimension_numbers = #tpu.dot_dimension_numbers<[1], [0], [0], [1], [0, 0, 1, 1], [], []>} : vector<8x12xbf16>, vector<12x16xbf16>, vector<8x16xf32> -> vector<8x16xf32>
    %c0_14 = arith.constant 0 : index
    %c0_15 = arith.constant 0 : index
    %18 = vector.load %arg7[%c0_14, %c0_15] : memref<8x1xf32, #tpu.memory_space<vmem>>, vector<8x1xf32>
    %19 = vector.broadcast %18 : vector<8x1xf32> to vector<8x16xf32>
    %20 = vector.broadcast %3 : vector<1x16xf32> to vector<8x16xf32>
    %21 = arith.mulf %19, %20 : vector<8x16xf32>
    %22 = arith.addf %17, %21 : vector<8x16xf32>
    %23 = vector.broadcast %5 : vector<8x1xf32> to vector<8x16xf32>
    %24 = arith.addf %22, %23 : vector<8x16xf32>
    %25 = vector.extract_strided_slice %24 {offsets = [0, 0], sizes = [4, 16], strides = [1, 1]} : vector<8x16xf32> to vector<4x16xf32>
    %26 = arith.negf %25 : vector<4x16xf32>
    %27 = math.exp %26 : vector<4x16xf32>
    %cst_16 = arith.constant 1.000000e+00 : f32
    %28 = vector.broadcast %cst_16 : f32 to vector<4x16xf32>
    %29 = arith.addf %28, %27 : vector<4x16xf32>
    %30 = arith.divf %28, %29 : vector<4x16xf32>
    %31 = vector.extract_strided_slice %24 {offsets = [4, 0], sizes = [4, 16], strides = [1, 1]} : vector<8x16xf32> to vector<4x16xf32>
    %32 = math.tanh %31 : vector<4x16xf32>
    %33 = arith.mulf %30, %32 : vector<4x16xf32>
    %c0_17 = arith.constant 0 : index
    %c0_18 = arith.constant 0 : index
    %34 = vector.load %arg8[%c0_17, %c0_18] : memref<8x4xbf16, #tpu.memory_space<vmem>>, vector<8x4xbf16>
    %35 = arith.truncf %33 : vector<4x16xf32> to vector<4x16xbf16>
    %cst_19 = arith.constant dense<0.000000e+00> : vector<8x16xf32>
    %36 = tpu.matmul %34, %35, %cst_19 {dimension_numbers = #tpu.dot_dimension_numbers<[1], [0], [0], [1], [0, 0, 1, 1], [], []>} : vector<8x4xbf16>, vector<4x16xbf16>, vector<8x16xf32> -> vector<8x16xf32>
    %c0_20 = arith.constant 0 : index
    %c0_21 = arith.constant 0 : index
    %37 = vector.load %arg9[%c0_20, %c0_21] : memref<8x1xf32, #tpu.memory_space<vmem>>, vector<8x1xf32>
    %38 = vector.broadcast %37 : vector<8x1xf32> to vector<8x16xf32>
    %39 = arith.addf %36, %38 : vector<8x16xf32>
    %cst_22 = arith.constant 0.000000e+00 : f32
    %40 = vector.broadcast %cst_22 : f32 to vector<8x16xf32>
    %41 = arith.cmpf oge, %39, %40 : vector<8x16xf32>
    %cst_23 = arith.constant 4.000000e-01 : f32
    %42 = vector.broadcast %cst_23 : f32 to vector<8x16xf32>
    %43 = arith.mulf %42, %39 : vector<8x16xf32>
    %44 = arith.select %41, %39, %43 : vector<8x16xi1>, vector<8x16xf32>
    %45 = vector.extract_strided_slice %44 {offsets = [0, 0], sizes = [4, 16], strides = [1, 1]} : vector<8x16xf32> to vector<4x16xf32>
    %46 = arith.addf %1, %45 : vector<4x16xf32>
    %cst_24 = arith.constant 0.707106769 : f32
    %47 = vector.broadcast %cst_24 : f32 to vector<4x16xf32>
    %48 = arith.mulf %46, %47 : vector<4x16xf32>
    %c0_25 = arith.constant 0 : index
    %c0_26 = arith.constant 0 : index
    %c0_27 = arith.constant 0 : index
    %49 = vector.load %arg10[%c0_25, %c0_26, %c0_27] : memref<1x4x16xf32, #tpu.memory_space<vmem>>, vector<1x4x16xf32>
    %50 = vector.shape_cast %49 : vector<1x4x16xf32> to vector<4x16xf32>
    %51 = vector.shape_cast %48 : vector<4x16xf32> to vector<1x4x16xf32>
    tpu.vector_store %arg10[%c0_25, %c0_26, %c0_27], %51 {strides = array<i32>} : memref<1x4x16xf32, #tpu.memory_space<vmem>>, vector<1x4x16xf32>,
    %52 = vector.extract_strided_slice %44 {offsets = [4, 0], sizes = [4, 16], strides = [1, 1]} : vector<8x16xf32> to vector<4x16xf32>
    %c0_28 = arith.constant 0 : index
    %c0_29 = arith.constant 0 : index
    %c0_30 = arith.constant 0 : index
    %53 = vector.load %arg11[%c0_28, %c0_29, %c0_30] : memref<1x4x16xf32, #tpu.memory_space<vmem>>, vector<1x4x16xf32>
    %54 = vector.shape_cast %53 : vector<1x4x16xf32> to vector<4x16xf32>
    %55 = vector.shape_cast %52 : vector<4x16xf32> to vector<1x4x16xf32>
    tpu.vector_store %arg11[%c0_28, %c0_29, %c0_30], %55 {strides = array<i32>} : memref<1x4x16xf32, #tpu.memory_space<vmem>>, vector<1x4x16xf32>,
    return
  }
  func.func @transform_0(%arg0: i32, %arg1: i32) -> (i32, i32, i32) {
    %c0_i32 = arith.constant 0 : i32
    %c0_i32_0 = arith.constant 0 : i32
    return %arg0, %c0_i32, %arg1 : i32, i32, i32
  }
  func.func @transform_1(%arg0: i32, %arg1: i32) -> (i32, i32, i32) {
    %c0_i32 = arith.constant 0 : i32
    %c0_i32_0 = arith.constant 0 : i32
    return %arg0, %c0_i32, %arg1 : i32, i32, i32
  }
  func.func @transform_2(%arg0: i32, %arg1: i32) -> (i32, i32, i32, i32) {
    %c0_i32 = arith.constant 0 : i32
    %c0_i32_0 = arith.constant 0 : i32
    %c0_i32_1 = arith.constant 0 : i32
    return %arg0, %arg1, %c0_i32, %c0_i32_0 : i32, i32, i32, i32
  }
  func.func @transform_3(%arg0: i32, %arg1: i32) -> (i32, i32, i32) {
    %c0_i32 = arith.constant 0 : i32
    %c0_i32_0 = arith.constant 0 : i32
    %c0_i32_1 = arith.constant 0 : i32
    return %arg0, %c0_i32, %c0_i32_0 : i32, i32, i32
  }
  func.func @transform_4(%arg0: i32, %arg1: i32) -> (i32, i32) {
    %c0_i32 = arith.constant 0 : i32
    %c0_i32_0 = arith.constant 0 : i32
    %c0_i32_1 = arith.constant 0 : i32
    return %c0_i32, %c0_i32_0 : i32, i32
  }
  func.func @transform_5(%arg0: i32, %arg1: i32) -> (i32, i32) {
    %c0_i32 = arith.constant 0 : i32
    %c0_i32_0 = arith.constant 0 : i32
    %c0_i32_1 = arith.constant 0 : i32
    return %c0_i32, %c0_i32_0 : i32, i32
  }
  func.func @transform_6(%arg0: i32, %arg1: i32) -> (i32, i32) {
    %c0_i32 = arith.constant 0 : i32
    %c0_i32_0 = arith.constant 0 : i32
    %c0_i32_1 = arith.constant 0 : i32
    return %c0_i32, %c0_i32_0 : i32, i32
  }
  func.func @transform_7(%arg0: i32, %arg1: i32) -> (i32, i32) {
    %c0_i32 = arith.constant 0 : i32
    %c0_i32_0 = arith.constant 0 : i32
    %c0_i32_1 = arith.constant 0 : i32
    return %c0_i32, %c0_i32_0 : i32, i32
  }
  func.func @transform_8(%arg0: i32, %arg1: i32) -> (i32, i32, i32) {
    %c0_i32 = arith.constant 0 : i32
    %c0_i32_0 = arith.constant 0 : i32
    return %arg0, %c0_i32, %arg1 : i32, i32, i32
  }
  func.func @transform_9(%arg0: i32, %arg1: i32) -> (i32, i32, i32) {
    %c0_i32 = arith.constant 0 : i32
    %c0_i32_0 = arith.constant 0 : i32
    return %arg0, %c0_i32, %arg1 : i32, i32, i32
  }
}

</mosaic_0001>

<bundles_post_ra>
// kernel: residual_block_forward.1
= control target key start
LH: loop header
LB: loop body
LE: loop exit
PB: predicated region body
PF: predicated region fallthrough
CT: control target
= control target key end

     0   :  { %s1232_s0 = inlined_call_operand.vmem [shape: f32[2,4,16], index: 0, kind: input, shape index: {}]   ;;  %s1233_s1 = inlined_call_operand.vmem [shape: f32[2,1,16], index: 1, kind: input, shape index: {}]   ;;  %s1234_s2 = inlined_call_operand.vmem [shape: f32[2,1,4,4], index: 2, kind: input, shape index: {}]   ;;  %s1235_s3 = inlined_call_operand.vmem [shape: f32[2,8,1], index: 3, kind: input, shape index: {}]   ;;  %s1236_s4 = inlined_call_operand.vmem [shape: bf16[8,12], index: 4, kind: input, shape index: {}]   ;;  %s1237_s5 = inlined_call_operand.vmem [shape: f32[8,1], index: 5, kind: input, shape index: {}]   ;;  %s1238_s6 = inlined_call_operand.vmem [shape: bf16[8,4], index: 6, kind: input, shape index: {}]   ;;  %s1239_s7 = inlined_call_operand.vmem [shape: f32[8,1], index: 7, kind: input, shape index: {}]   ;;  %s1240_s8 = inlined_call_operand.hbm [shape: f32[2,4,16], index: 8, kind: output, shape index: {0}]   ;;  %s1241_s9 = inlined_call_operand.hbm [shape: f32[2,4,16], index: 9, kind: output, shape index: {1}]  }
   0x1   :  { %1245 = sst [smem:[#allocation10_spill]] %s1232_s0 }
   0x2   :  { %15 = vsyncpa [#allocation3], 0 }
   0x3   :  { %17 = vsyncpa [#allocation3 + $0x1], 0 }
   0x4   :  { %18 = vsyncpa [#allocation5], 0 }
   0x5   :  { %20 = vsyncpa [#allocation5 + $0x1], 0  ;;  %s1058_s30 = smov 0   ;;  %s1060_s10 = smov 0  }
   0x6   :  { %s1062_s11 = smov 0   ;;  %s1064_s12 = smov 0  }
   0x7   :  { %s1066_s13 = smov 0   ;;  %s1068_s14 = smov 0  }
   0x8 LB: > { %1246 = sst [smem:[#allocation8_spill]] %s994_s13  ;;  %s782_s15 = sadd.s32 4294967295, %s998_s14   ;;  %s998_s14 = sphi %s1068_s14, %s26_s14   ;;  %s994_s13 = sphi %s1066_s13, %s1254_s13   ;;  %s990_s12 = sphi %s1064_s12, %s1253_s12   ;;  %s986_s11 = sphi %s1062_s11, %s1257_s11   ;;  %s982_s10 = sphi %s1060_s10, %s1256_s10   ;;  %s978_s30 = sphi %s1058_s30, %s1255_s30  }
   0x9   : > { %s783_s16 = sadd.s32 4294967294, %s998_s14   ;;  %s38_s17 = sadd.s32 1, %s994_s13 }
   0xa   : > { %s241_s18 = sadd.s32 1, %s986_s11  ;;  %p40_p0 = scmp.ge.s32.totalorder %s38_s17, 2 }
   0xb   : > { %p251_p1 = scmp.ne.s32.totalorder %s986_s11, %s982_s10  ;;  %p252_p2 = scmp.eq.s32.totalorder %s782_s15, 1 }
   0xc   : > { %p257_p3 = scmp.ne.s32.totalorder %s982_s10, %s978_s30  ;;  %s1259_s17 = smov (%p40_p0, %s38_s17), 0 }
   0xd   : > { %1247 = sst [smem:[#allocation9_spill]] %s1259_s17  ;;  %p1098_p4 = por %p252_p2, %p251_p1 }
   0xe   : > { %p258_p5 = scmp.eq.s32.totalorder %s783_s16, 1  ;;  %s236_s20 = ssub.s32 %s994_s13, %s1259_s17 }
   0xf   : > { %p786_p6 = scmp.ge.s32.totalorder %s998_s14, 1  ;;  %p239_p7 = scmp.eq.s32.totalorder %s236_s20, 0 }
  0x10   : > { %p1105_p8 = por %p258_p5, %p257_p3  ;;  %p352_p9 = scmp.lt.s32.totalorder %s998_s14, 3 }
  0x11   : > { %s1111_s22 = scalar_select %p239_p7, %s986_s11, %s241_s18  }
  0x12   : > { %p353_p10 = pnand %p786_p6, %p352_p9 }
  0x13   : > { %p412_p11 = scmp.lt.s32.totalorder (!%p353_p10), %s990_s12, 1  ;;  %s1250_s0 = sld [smem:[#allocation10_spill]] (!%p353_p10) }
  0x14   : > { %356 = sbr.rel (%p353_p10) target bundleno = 627 (0x273), region = 52  ;;  %s1003_s18 = smov (!%p353_p10), 2  }
  0x15   : > { %s1004_s20 = smov (!%p353_p10), 12   ;;  %s1150_s25 = sand.u32 (!%p353_p10), 1, %s982_s10  }
  0x16   : > { %s787_s26 = sshll.u32 (!%p353_p10), %s1150_s25, 2 }
  0x19   : > { %v1000_v0 = vmov 0.0   ;;  %s1115_s23 = scalar_select %p412_p11, %s990_s12, 1  ;;  %vm1001_vm0 = vmmov 0   ;;  %v1002_v3 = vmov 0   ;;  %v462_v4 = vld [vmem:[%s1237_s5] sm:$0xff]  ;;  %vm445_vm1 = vcmask 15360  }
  0x1a   : > { %806 = vmatprep.subr.bf16.mxu0 %v1000_v0  ;;  %812 = vmatprep.subr.bf16.mxu1 %v1000_v0  ;;  %v542_v5 = vld [vmem:[%s1239_s7] sm:$0xff]  ;;  %vm454_vm2 = vcmask 113664   ;;  %vm458_vm3 = vcmask 1043456   ;;  %vm479_vm4 = vcmask 1045504   ;;  %vm475_vm5 = vcmask 97280  }
  0x1b   : > { %808 = vmatprep.mubr.msk.bf16.mxu0 %vm1001_vm0, %v1000_v0  ;;  %814 = vmatprep.mubr.msk.bf16.mxu1 %vm1001_vm0, %v1000_v0  ;;  %s789_s24 = sshll.u32 %s1115_s23, 2  ;;  %s791_s16 = sshll.u32 %s1115_s23, 3  ;;  %v461_v16 = vld [vmem:[%s1236_s4] sm:$0xf]  ;;  %vm552_vm6 = vcmask 1041408   ;;  %vm548_vm7 = vcmask 31744  }
  0x1c   : > { %s418_s27 = scalar_lea.vmem %s1250_s0, %s789_s24  ;;  %s431_s15 = scalar_lea.vmem %s1234_s2, %s789_s24  ;;  %884 = vset.pattern.permute.xlu1 %v1002_v3  ;;  %885 = vset.pattern.permute.xlu0 %v1002_v3  ;;  %v540_v36 = vld [vmem:[%s1238_s6] sm:$0xf]  ;;  %vm603_vm9 = vcmask 130052   ;;  %vm601_vm10 = vcmask 125952  }
  0x1d   : > { %v1124_v1 = vld [vmem:[%s418_s27] sm:$0xf]  ;;  %s435_s24 = scalar_lea.vmem %s1235_s3, %s791_s16  ;;  %s1005_s27 = smov 126  }
  0x1e   : > { %v440_v2 = vld [vmem:[%s431_s15] sm:$0xf]  ;;  %442 = vrot.lane.b32.xlu0 %v1124_v1, %s1003_s18  ;;  %v456_v8 = vrot.slane %v1124_v1, 4  ;;  %s424_s18 = scalar_lea.vmem %s1233_s1, %s1115_s23  ;;  %s1163_s15 = scalar_lea.vmem [#allocation2], %s787_s26 }
  0x1f   : > { %451 = vrot.lane.b32.xlu1 %v440_v2, %s1004_s20  ;;  %v439_v6 = vld [vmem:[%s435_s24] sm:$0xff]  ;;  %s1244_s24 = sshll.u32 %s990_s12, 6  ;;  %s1006_s20 = smov [#allocation4]  }
  0x20   : > { %v792_v17 = vld [vmem:[%s424_s18] ss:$0 sm:$0xff]  ;;  %s1159_s17 = scalar_lea.hbm %s1241_s9, %s1244_s24  ;;  %s611_s18 = scalar_lea.sflag [#allocation5], %s1150_s25 }
  0x21   : > { %s896_s29 = sshll.u32 %s1006_s20, 4  ;;  %s897_s29 = int_to_ptr.vmem [resolvable:$false] %s896_s29 }
  0x22   : > { %447 = vrot.lane.b32.xlu0 %v1124_v1, %s1005_s27  ;;  %s411_s27 = scalar_lea.vmem [#allocation4], %s787_s26  ;;  %s898_s13 = scalar_lea.vmem %s897_s29, 128 }
  0x23   : > { %465 = vperm.xlu1 %884, %v462_v4   ;;  %s639_s28 = sshll.u32 %s411_s27, 4  ;;  %s1161_s28 = int_to_ptr.vmem [resolvable:$true] %s639_s28 }
  0x24   : > { %s892_s23 = scalar_lea.vmem %s1161_s28, 64  ;;  %p899_p1 = scmp.lt.s32.totalorder %s1161_s28, %s897_s29 }
  0x25   : > { %p893_p12 = scmp.ne.s32.totalorder %s1161_s28, %s892_s23  ;;  %p900_p2 = scmp.lt.s32.totalorder %s898_s13, %s892_s23 }
  0x26   : > { %525 = vperm.xlu0 %885, %v439_v6  }
  0x27   : > { %545 = vperm.xlu1 %884, %v542_v5   ;;  %p894_p13 = pnand %p893_p12, %p1098_p4  ;;  %p901_p3 = por %p900_p2, %p899_p1 }
  0x29   : > { %p895_p0 = pneg %p894_p13 }
  0x2b   : > { %p902_p5 = pnand %p901_p3, %p895_p0 }
  0x90   : > { %v443_v7 = vpop.permute.xlu0 %442 }
  0x91   : > { %v446_v9 = vsel %vm445_vm1, %v440_v2, %v443_v7  ;;  %v452_v10 = vpop.permute.xlu1 %451 }
  0x92   : > { %v459_v13 = vsel %vm458_vm3, %v446_v9, %v456_v8 }
  0x94   : > { %v448_v11 = vpop.permute.xlu0 %447 }
  0x95   : > { %v455_v12 = vsel %vm454_vm2, %v448_v11, %v452_v10 }
  0x96   : > { %v460_v14 = vpack.c.bf16 %v455_v12, %v459_v13 }
  0x98   : > { %v481_v15 = vsel %vm479_vm4, %v460_v14, 0 }
  0x99   : > { %807 = vmatpush3.bf16.msra.mxu0 %v481_v15 }
  0x9c   : > { %809 = vmatmul.mubr.msk.bf16.vlgmr.msra.gmra.mxu0 %vm475_vm5, %v461_v16 }
  0x9e   : > { %v466_v18 = vpop.permute.xlu1 %465 }
  0x9f   : > { %v474_v19 = vmul.f32 %v792_v17, %v466_v18 }
  0xa1   : > { %v526_v21 = vpop.permute.xlu0 %525 }
  0xa2   : > { %v546_v37 = vpop.permute.xlu1 %545 }
 0x15c   : > { %v517_v20 = vpop.f32.mrf.mxu0 }
 0x15d   : > { %v518_v22 = vadd.f32 %v517_v20, %v474_v19 }
 0x15e   : > { %v810_v23 = vpop.f32.mrf.mxu0 }
 0x15f   : > { %v528_v24 = vadd.f32 %v526_v21, %v518_v22 }
 0x160   : > { %v520_v25 = vpop.f32.mrf.mxu0 }
 0x161   : > { %v794_v26 = vmul.f32 -1.442695, %v528_v24 }
 0x162   : > { %v811_v27 = vpop.f32.mrf.mxu0 }
 0x163   : > { %886 = vpow2.f32 %v794_v26 }
 0x164   : > { %888 = vtanh.f32 %v528_v24 }
 0x170   : > { %v887_v28 = vpop.eup %886 }
 0x171   : > { %v532_v29 = vadd.f32 1.0, %v887_v28  ;;  %v889_v30 = vpop.eup %888 }
 0x172   : > { %v537_v31 = vrot.slane %v889_v30, 4 }
 0x173   : > { %890 = vrcp.f32 %v532_v29 }
 0x180   : > { %v891_v32 = vpop.eup %890 }
 0x181   : > { %v539_v33 = vmul.f32 %v891_v32, %v537_v31 }
 0x183   : > { %v541_v34 = vpack.c.bf16 %v539_v33, %v539_v33 }
 0x185   : > { %v554_v35 = vsel %vm552_vm6, %v541_v34, 0 }
 0x186   : > { %813 = vmatpush3.bf16.msra.mxu1 %v554_v35 }
 0x189   : > { %815 = vmatmul.mubr.msk.bf16.vlgmr.msra.gmra.mxu1 %vm548_vm7, %v540_v36 }
 0x249   : > { %v590_v38 = vpop.f32.mrf.mxu1 }
 0x24a   : > { %v591_v39 = vadd.f32 %v590_v38, %v546_v37 }
 0x24b   : > { %v816_v40 = vpop.f32.mrf.mxu1 }
 0x24c   : > { %vm596_vm8 = vcmp.ge.f32.partialorder %v591_v39, 0.0  ;;  %v597_v41 = vmul.f32 0.4, %v591_v39 }
 0x24d   : > { %v593_v42 = vpop.f32.mrf.mxu1 }
 0x24e   : > { %v598_v43 = vsel %vm596_vm8, %v591_v39, %v597_v41 }
 0x24f   : > { %v599_v44 = vadd.f32 %v598_v43, %v1124_v1  ;;  %v817_v45 = vpop.f32.mrf.mxu1  ;;  %604 = vst.msk [vmem:[%s411_s27 - $0x4] sm:$0xf0] %vm603_vm9, %v598_v43 }
 0x250   : > { %905 = shalt.err (!%p902_p5)
}
 0x251   : > { %s906_s26 = scalar_lea.hbm %s1159_s17, 64  ;;  %s910_s20 = scalar_lea.hbm %s1241_s9, 128 }
 0x252   : > { %p907_p6 = scmp.ne.s32.totalorder %s1159_s17, %s906_s26  ;;  %p911_p10 = scmp.lt.s32.totalorder %s1159_s17, %s1241_s9 }
 0x253   : > { %p912_p11 = scmp.lt.s32.totalorder %s910_s20, %s906_s26 }
 0x254   : > { %p908_p7 = pnand %p907_p6, %p1098_p4 }
 0x255   : > { %p913_p12 = por %p912_p11, %p911_p10 }
 0x256   : > { %p909_p9 = pneg %p908_p7 }
 0x258   : > { %p914_p13 = pnand %p913_p12, %p909_p9 }
 0x25a   : > { %917 = shalt.err (!%p914_p13)
}
 0x25b   : > { %819 = dma.vmem_to_hbm [thread:$0]  (%p1098_p4), %s1161_s28, 64, %s1159_s17, %s611_s18   ;;  %v600_v46 = vmul.f32 0.70710677, %v599_v44 }
 0x25c   : > { %s1251_s16 = sshll.u32 %s990_s12, 6  ;;  %s1252_s24 = sshll.u32 %s1163_s15, 4  ;;  %s626_s24 = int_to_ptr.vmem [resolvable:$true] %s1252_s24 }
 0x25d   : > { %s623_s0 = scalar_lea.hbm %s1240_s8, %s1251_s16  ;;  %602 = vst.msk [vmem:[%s1163_s15] sm:$0xf] %vm601_vm10, %v600_v46  ;;  %s606_s13 = scalar_lea.sflag [#allocation3], %s1150_s25 }
 0x25e   : > { %s918_s26 = scalar_lea.vmem %s626_s24, 64  ;;  %s1007_s27 = smov [#allocation2]  }
 0x25f   : > { %p919_p0 = scmp.ne.s32.totalorder %s626_s24, %s918_s26  ;;  %s922_s20 = sshll.u32 %s1007_s27, 4  ;;  %s923_s20 = int_to_ptr.vmem [resolvable:$false] %s922_s20 }
 0x260   : > { %s924_s28 = scalar_lea.vmem %s923_s20, 128  ;;  %p925_p3 = scmp.lt.s32.totalorder %s626_s24, %s923_s20 }
 0x261   : > { %p920_p1 = pnand %p919_p0, %p1098_p4  ;;  %p926_p5 = scmp.lt.s32.totalorder %s924_s28, %s918_s26 }
 0x263   : > { %p921_p2 = pneg %p920_p1  ;;  %p927_p6 = por %p926_p5, %p925_p3 }
 0x265   : > { %p928_p7 = pnand %p927_p6, %p921_p2 }
 0x267   : > { %931 = shalt.err (!%p928_p7)
}
 0x268   : > { %s932_s12 = scalar_lea.hbm %s623_s0, 64  ;;  %s936_s15 = scalar_lea.hbm %s1240_s8, 128 }
 0x269   : > { %p933_p9 = scmp.ne.s32.totalorder %s623_s0, %s932_s12  ;;  %p937_p12 = scmp.lt.s32.totalorder %s623_s0, %s1240_s8 }
 0x26a   : > { %p938_p13 = scmp.lt.s32.totalorder %s936_s15, %s932_s12 }
 0x26b   : > { %p934_p10 = pnand %p933_p9, %p1098_p4 }
 0x26c   : > { %p939_p0 = por %p938_p13, %p937_p12 }
 0x26d   : > { %p935_p11 = pneg %p934_p10 }
 0x26f   : > { %p940_p1 = pnand %p939_p0, %p935_p11 }
 0x271   : > { %943 = shalt.err (!%p940_p1)
}
 0x272   : > { %818 = dma.vmem_to_hbm [thread:$0]  (%p1098_p4), %s626_s24, 64, %s623_s0, %s606_s13  }
 0x273 PF: > { %p829_p2 = scmp.ge.s32.totalorder %s998_s14, 2  ;;  %s651_s23 = sand.u32 1, %s978_s30  }
 0x274   : > { %s652_s29 = scalar_lea.sflag [#allocation3], %s651_s23 }
 0x275   : > { %p823_p3 = pnand %p829_p2, %p1105_p8 }
 0x277   : > { %p824_p5 = pneg %p823_p3 }
 0x279   : > { %969 = dma.done.wait (%p824_p5), %s652_s29, 64  }
 0x27a   : > { %971 = vsyncadd (%p824_p5), %s652_s29, 4294967232  ;;  %s661_s26 = scalar_lea.sflag [#allocation5], %s651_s23 }
 0x27b   : > { %973 = dma.done.wait (%p824_p5), %s661_s26, 64  }
 0x27c   : > { %975 = vsyncadd (%p824_p5), %s661_s26, 4294967232  ;;  %s26_s14 = sadd.s32 1, %s998_s14   ;;  %s1253_s12 = sld [smem:[#allocation8_spill]] }
 0x27d   : > { %p23_p6 = scmp.ge.s32.totalorder %s26_s14, 4   ;;  %s1254_s13 = sld [smem:[#allocation9_spill]] }
 0x27e   : > { %s1255_s30 = smov %s982_s10  ;;  %s1256_s10 = smov %s986_s11 }
 0x27f   : > { %s1257_s11 = smov %s1111_s22  ;;  %25 = sbr.rel (!%p23_p6) target bundleno = 8 (0x8), region = 113 }
 0x284   :  { %666 = vsyncpa [#allocation3], 1 }
 0x285   :  { %668 = vsyncpa [#allocation3 + $0x1], 1 }
 0x286   :  { %669 = vsyncpa [#allocation5], 1 }
 0x287   :  { %671 = vsyncpa [#allocation5 + $0x1], 1 }

</bundles_post_ra>
